<compile_context>
chip_gen: v7x
topology: tpu7x:2x2x1
jax: 0.10.0
libtpu: 0.0.40
codegen_flags: <defaults>
</compile_context>

<pallas_src>
import functools

import jax
import jax.numpy as jnp
import numpy as np
from jax.experimental import pallas as pl
from jax.experimental.pallas import tpu as pltpu

_LANE = 128
_TILE_ROWS = 1024                 # (1024, 128) f32 block = 512 KiB per buffer
_SINGLE_BLOCK_ROW_LIMIT = 4096    # <= 2 MiB f32 -> single block, no grid


# ---------------------------------------------------------------------------
# Kernels
# ---------------------------------------------------------------------------
def _make_static_kernel(value, dtype):
    """Kernel with 10, value, 0.1 baked in at trace time (no SMEM operand)."""
    ten = np.asarray(10.0, dtype)
    val = np.asarray(value, dtype)
    tenth = np.asarray(0.1, dtype)

    def kernel(x_ref, o_ref):
        # Same associativity as PyTorch: ((x + 10) + value) + 0.1
        o_ref[...] = ((x_ref[...] + ten) + val) + tenth

    return kernel


def _dynamic_kernel(v_ref, x_ref, o_ref):
    """`value` supplied at runtime as a (1,) SMEM scalar."""
    ten = jnp.asarray(10.0, x_ref.dtype)
    tenth = jnp.asarray(0.1, x_ref.dtype)
    o_ref[...] = ((x_ref[...] + ten) + v_ref[0]) + tenth


# ---------------------------------------------------------------------------
# Layout helpers (lane-dense (rows, 128) slab)
# ---------------------------------------------------------------------------
def _to_lane_dense(x):
    total = x.size
    flat = x.reshape(-1)
    pad = (-total) % _LANE
    if pad:
        flat = jnp.pad(flat, (0, pad))
    return flat.reshape(-1, _LANE), total


def _from_lane_dense(y2d, total, shape):
    return y2d.reshape(-1)[:total].reshape(shape)


# ---------------------------------------------------------------------------
# pallas_call driver
# ---------------------------------------------------------------------------
def _run_elementwise(kernel, x2d, extra_operands=()):
    rows = x2d.shape[0]
    n_extra = len(extra_operands)
    extra_specs = [pl.BlockSpec(memory_space=pltpu.SMEM)] * n_extra

    if rows <= _SINGLE_BLOCK_ROW_LIMIT:
        # Small case: whole array is one VMEM block, no grid, no index_map.
        return pl.pallas_call(
            kernel,
            out_shape=jax.ShapeDtypeStruct(x2d.shape, x2d.dtype),
            in_specs=extra_specs + [pl.BlockSpec(memory_space=pltpu.VMEM)],
            out_specs=pl.BlockSpec(memory_space=pltpu.VMEM),
        )(*extra_operands, x2d)

    # Large case: tile over rows; pad rows up to a tile multiple so every
    # block is full-size (all loads/stores unmasked).
    pad_rows = (-rows) % _TILE_ROWS
    if pad_rows:
        x2d = jnp.pad(x2d, ((0, pad_rows), (0, 0)))
    padded_rows = rows + pad_rows

    def _xmap(i):
        return (i, 0)

    out = pl.pallas_call(
        kernel,
        out_shape=jax.ShapeDtypeStruct((padded_rows, _LANE), x2d.dtype),
        grid_spec=pl.GridSpec(
            grid=(padded_rows // _TILE_ROWS,),
            in_specs=extra_specs
            + [pl.BlockSpec((_TILE_ROWS, _LANE), _xmap)],
            out_specs=pl.BlockSpec((_TILE_ROWS, _LANE), _xmap),
        ),
        compiler_params=pltpu.CompilerParams(
            dimension_semantics=("parallel",)),
    )(*extra_operands, x2d)
    return out[:rows]


# ---------------------------------------------------------------------------
# Forward
# ---------------------------------------------------------------------------
@functools.partial(jax.jit, static_argnums=(1,))
def _forward_static(x1, value):
    x2d, total = _to_lane_dense(x1)
    kernel = _make_static_kernel(value, x1.dtype)
    y2d = _run_elementwise(kernel, x2d)
    return _from_lane_dense(y2d, total, x1.shape)


@jax.jit
def _forward_dynamic(x1, v):
    x2d, total = _to_lane_dense(x1)
    y2d = _run_elementwise(_dynamic_kernel, x2d, extra_operands=(v,))
    return _from_lane_dense(y2d, total, x1.shape)


def model_forward(x1: jax.Array, value) -> jax.Array:
    """Equivalent of Model.forward(x1, value) = ((x1 + 10) + value) + 0.1."""
    if isinstance(value, (bool, int, float, np.integer, np.floating)):
        # Static Python scalar: bake it into the kernel at trace time.
        return _forward_static(x1, float(value))
    # Dynamic (traced) value: pass through SMEM.
    v = jnp.asarray(value, dtype=x1.dtype).reshape(1)
    return _forward_dynamic(x1, v)


if __name__ == "__main__":
    key = jax.random.PRNGKey(0)
    # Same shape as the PyTorch script: x1 = torch.randn(1, 1, 64, 64)
    x1 = jax.random.normal(key, (1, 1, 64, 64), dtype=jnp.float32)
    value = 1

    # Reference in plain JAX, PyTorch associativity: ((x1 + 10) + value) + 0.1
    ref = (x1 + 10.0) + value + 0.1

    out = model_forward(x1, value)
    out = jax.block_until_ready(out)

    assert out.shape == (1, 1, 64, 64)
    # Kernel keeps the exact 3-add associativity -> bit-exact vs reference.
    assert jnp.allclose(out, ref, atol=1e-6, rtol=1e-6), "mismatch vs reference"

    print("KERNEL_OK")
</pallas_src>

<mosaic_0001>
module attributes {stable_mosaic.version = 11 : i64} {
  func.func @kernel(%arg0: memref<32x128xf32, #tpu.memory_space<vmem>>, %arg1: memref<32x128xf32, #tpu.memory_space<vmem>>) attributes {dimension_semantics = [], scalar_prefetch = 0 : i64, scratch_operands = 0 : i64, tpu.core_type = #tpu.core_type<tc>} {
    %c0 = arith.constant 0 : index
    %c0_0 = arith.constant 0 : index
    %0 = vector.load %arg0[%c0, %c0_0] : memref<32x128xf32, #tpu.memory_space<vmem>>, vector<32x128xf32>
    %cst = arith.constant 1.000000e+01 : f32
    %1 = vector.broadcast %cst : f32 to vector<32x128xf32>
    %2 = arith.addf %0, %1 : vector<32x128xf32>
    %cst_1 = arith.constant 1.000000e+00 : f32
    %3 = vector.broadcast %cst_1 : f32 to vector<32x128xf32>
    %4 = arith.addf %2, %3 : vector<32x128xf32>
    %cst_2 = arith.constant 1.000000e-01 : f32
    %5 = vector.broadcast %cst_2 : f32 to vector<32x128xf32>
    %6 = arith.addf %4, %5 : vector<32x128xf32>
    %c0_3 = arith.constant 0 : index
    %c0_4 = arith.constant 0 : index
    %7 = vector.load %arg1[%c0_3, %c0_4] : memref<32x128xf32, #tpu.memory_space<vmem>>, vector<32x128xf32>
    tpu.vector_store %arg1[%c0_3, %c0_4], %6 {strides = array<i32>} : memref<32x128xf32, #tpu.memory_space<vmem>>, vector<32x128xf32>,
    return
  }
}

</mosaic_0001>

<bundles_post_ra>
// kernel: _forward_static.1
= control target key start
LH: loop header
LB: loop body
LE: loop exit
PB: predicated region body
PF: predicated region fallthrough
CT: control target
= control target key end

     0   :  { %s66_s0 = inlined_call_operand.vmem [shape: f32[32,128], index: 0, kind: input, shape index: {}]   ;;  %s67_s1 = inlined_call_operand.vmem [shape: f32[32,128], index: 1, kind: output, shape index: {}]  }
   0x1   :  { %v8_v0 = vld [vmem:[%s66_s0] sm:$0xff]  ;;  %v9_v1 = vld [vmem:[%s66_s0 + $0x8] sm:$0xff]  ;;  %v10_v2 = vld [vmem:[%s66_s0 + $0x10] sm:$0xff] }
   0x2   :  { %v12_v3 = vadd.f32 10.0, %v8_v0  ;;  %v13_v4 = vadd.f32 10.0, %v9_v1  ;;  %v14_v5 = vadd.f32 10.0, %v10_v2  ;;  %v11_v6 = vld [vmem:[%s66_s0 + $0x18] sm:$0xff] }
   0x3   :  { %v15_v7 = vadd.f32 10.0, %v11_v6 }
   0x4   :  { %v16_v8 = vadd.f32 1.0, %v12_v3  ;;  %v17_v9 = vadd.f32 1.0, %v13_v4  ;;  %v18_v10 = vadd.f32 1.0, %v14_v5 }
   0x5   :  { %v19_v11 = vadd.f32 1.0, %v15_v7 }
   0x6   :  { %v20_v12 = vadd.f32 0.1, %v16_v8  ;;  %v21_v13 = vadd.f32 0.1, %v17_v9  ;;  %v22_v14 = vadd.f32 0.1, %v18_v10 }
   0x7   :  { %v23_v15 = vadd.f32 0.1, %v19_v11 }
   0x8   :  { %24 = vst [vmem:[%s67_s1] sm:$0xff] %v20_v12  ;;  %25 = vst [vmem:[%s67_s1 + $0x8] sm:$0xff] %v21_v13 }
   0x9   :  { %26 = vst [vmem:[%s67_s1 + $0x10] sm:$0xff] %v22_v14  ;;  %27 = vst [vmem:[%s67_s1 + $0x18] sm:$0xff] %v23_v15 }

</bundles_post_ra>
